<compile_context>
chip_gen: v5e
topology: v5e:2x2
jax: 0.10.0
libtpu: 0.0.40
codegen_flags: <defaults>
</compile_context>

<pallas_src>
import functools

import jax
import jax.numpy as jnp
from jax.experimental import pallas as pl
from jax.experimental.pallas import tpu as pltpu

SUBLANE = 8
LANE = 128
# ~1 MiB per block at f32 (512 KiB at bf16); double-buffered in+out stays well
# under the 16/32/32 MiB default scoped-VMEM limits on v5e/v6e/v7x.
TARGET_BLOCK_ELEMS = 256 * 1024


def _ftswish_kernel(x_ref, o_ref, *, shift):
    # x_ref / o_ref: (TM, W) VMEM tiles in the tensor's native dtype.
    x = x_ref[...].astype(jnp.float32)
    y = jnp.maximum(x, 0.0) * jax.nn.sigmoid(x) + shift
    o_ref[...] = y.astype(o_ref.dtype)


def _choose_layout(n_padded):
    """Pick (rows, lane_width, row_tile) for a lane-dense slab of n_padded elems."""
    # Widest last dim (multiple of 128) that keeps rows a multiple of 8.
    for w in (4096, 2048, 1024, 512, 256, 128):
        if n_padded % (SUBLANE * w) == 0:
            rows = n_padded // w
            break
    # Largest row tile (multiple of 8) that divides rows, bounded by the VMEM
    # per-block budget.
    cap = max(SUBLANE, (TARGET_BLOCK_ELEMS // w) // SUBLANE * SUBLANE)
    tm = SUBLANE
    t = min(rows, cap)
    while t >= SUBLANE:
        if rows % t == 0:
            tm = t
            break
        t -= SUBLANE
    return rows, w, tm


def ftswish_plus(x, threshold=-0.25, sub=-0.1):
    """Elementwise relu(x)*sigmoid(x) + threshold - sub (sub skipped if None)."""
    shift = float(threshold) - (float(sub) if sub is not None else 0.0)
    orig_shape, orig_dtype = x.shape, x.dtype

    flat = x.reshape(-1)                      # native dtype, no f32 staging
    n = flat.shape[0]
    pad = (-n) % (SUBLANE * LANE)
    if pad:
        # Rare path: pad with zeros (relu(0)*sigmoid(0)+shift is finite).
        flat = jnp.pad(flat, (0, pad))
    rows, w, tm = _choose_layout(n + pad)
    x2d = flat.reshape(rows, w)

    grid = (rows // tm,)
    itemsize = jnp.dtype(orig_dtype).itemsize
    cost = pl.CostEstimate(
        flops=3 * n,                          # max, mul, add per element
        transcendentals=n,                    # one sigmoid per element
        bytes_accessed=2 * n * itemsize,      # stream read + write
    )

    out2d = pl.pallas_call(
        functools.partial(_ftswish_kernel, shift=shift),
        out_shape=jax.ShapeDtypeStruct((rows, w), orig_dtype),
        grid=grid,
        in_specs=[pl.BlockSpec((tm, w), lambda i: (i, 0))],
        out_specs=pl.BlockSpec((tm, w), lambda i: (i, 0)),
        compiler_params=pltpu.CompilerParams(
            dimension_semantics=("parallel",),   # shard grid across TCs (v7x)
        ),
        cost_estimate=cost,
    )(x2d)

    out = out2d.reshape(-1)
    if pad:
        out = out[:n]
    return out.reshape(orig_shape)


class FTSwishPlusPallas:
    """JAX/Pallas equivalent of the PyTorch `FTSwishPlus` module."""

    def __init__(self, threshold=-0.25, sub=-0.1, **kwargs):
        self.threshold = threshold
        self.sub = sub

    def __call__(self, x):
        return ftswish_plus(x, self.threshold, self.sub)


if __name__ == "__main__":
    key = jax.random.PRNGKey(0)
    # Small NCHW conv-style feature map.
    x = jax.random.normal(key, (2, 4, 16, 16), dtype=jnp.float32)

    module = FTSwishPlusPallas(threshold=-0.25, sub=-0.1)
    out = module(x)
    out = jax.block_until_ready(out)

    # Reference: relu(x)*sigmoid(x) + threshold - sub  (x.sub_(sub) subtracts sub)
    ref = jnp.maximum(x, 0.0) * jax.nn.sigmoid(x) + (-0.25) - (-0.1)
    assert out.shape == x.shape and out.dtype == x.dtype
    assert jnp.allclose(out, ref, atol=1e-5, rtol=1e-5), "mismatch vs reference"

    # Also exercise a shape that needs the pad/tail path and a bf16 input.
    x2 = jax.random.normal(jax.random.PRNGKey(1), (3, 5, 7), dtype=jnp.bfloat16)
    out2 = jax.block_until_ready(module(x2))
    ref2 = (jnp.maximum(x2.astype(jnp.float32), 0.0)
            * jax.nn.sigmoid(x2.astype(jnp.float32)) - 0.15).astype(jnp.bfloat16)
    assert out2.shape == x2.shape and out2.dtype == x2.dtype
    assert jnp.allclose(out2.astype(jnp.float32), ref2.astype(jnp.float32),
                        atol=2e-2, rtol=2e-2), "bf16 mismatch vs reference"

    print("KERNEL_OK")
</pallas_src>

<mosaic_0001>
module attributes {stable_mosaic.version = 11 : i64} {
  func.func @_ftswish_kernel(%arg0: i32, %arg1: memref<8x256xf32, #tpu.memory_space<vmem>>, %arg2: memref<8x256xf32, #tpu.memory_space<vmem>>) attributes {dimension_semantics = [#tpu.dimension_semantics<parallel>], iteration_bounds = array<i64: 1>, scalar_prefetch = 0 : i64, scratch_operands = 0 : i64, tpu.core_type = #tpu.core_type<tc>, window_params = [{transform_indices = @transform_0, window_bounds = array<i64: 8, 256>}, {transform_indices = @transform_1, window_bounds = array<i64: 8, 256>}]} {
    %c0 = arith.constant 0 : index
    %c0_0 = arith.constant 0 : index
    %0 = vector.load %arg1[%c0, %c0_0] : memref<8x256xf32, #tpu.memory_space<vmem>>, vector<8x256xf32>
    %cst = arith.constant 0.000000e+00 : f32
    %1 = vector.broadcast %cst : f32 to vector<8x256xf32>
    %2 = arith.maximumf %0, %1 : vector<8x256xf32>
    %3 = arith.negf %0 : vector<8x256xf32>
    %4 = math.exp %3 : vector<8x256xf32>
    %cst_1 = arith.constant 1.000000e+00 : f32
    %5 = vector.broadcast %cst_1 : f32 to vector<8x256xf32>
    %6 = arith.addf %5, %4 : vector<8x256xf32>
    %7 = arith.divf %5, %6 : vector<8x256xf32>
    %8 = arith.mulf %2, %7 : vector<8x256xf32>
    %cst_2 = arith.constant -1.500000e-01 : f32
    %9 = vector.broadcast %cst_2 : f32 to vector<8x256xf32>
    %10 = arith.addf %8, %9 : vector<8x256xf32>
    %c0_3 = arith.constant 0 : index
    %c0_4 = arith.constant 0 : index
    %11 = vector.load %arg2[%c0_3, %c0_4] : memref<8x256xf32, #tpu.memory_space<vmem>>, vector<8x256xf32>
    tpu.vector_store %arg2[%c0_3, %c0_4], %10 {strides = array<i32>} : memref<8x256xf32, #tpu.memory_space<vmem>>, vector<8x256xf32>,
    return
  }
  func.func @transform_0(%arg0: i32) -> (i32, i32) {
    %c0_i32 = arith.constant 0 : i32
    %c0_i32_0 = arith.constant 0 : i32
    return %arg0, %c0_i32 : i32, i32
  }
  func.func @transform_1(%arg0: i32) -> (i32, i32) {
    %c0_i32 = arith.constant 0 : i32
    %c0_i32_0 = arith.constant 0 : i32
    return %arg0, %c0_i32 : i32, i32
  }
}

</mosaic_0001>

<bundles_post_ra>
// kernel: tpu_custom_call.1
= control target key start
LH: loop header
LB: loop body
LE: loop exit
PB: predicated region body
PF: predicated region fallthrough
CT: control target
= control target key end

     0   :  { %6 = vsyncpa [#allocation3], 0  ;;  %s170_s0 = inlined_call_operand.hbm [shape: f32[8,256], index: 0, kind: input, shape index: {}]   ;;  %s171_s1 = inlined_call_operand.hbm [shape: f32[8,256], index: 1, kind: output, shape index: {}]  }
   0x1   :  { %7 = vsyncpa [#allocation4], 0  ;;  %s13_s8 = sshll.u32 %s170_s0, 4  ;;  %s152_s9 = smov [#allocation2]   ;;  %s14_s8 = int_to_ptr.hbm [resolvable:$true] %s13_s8 }
   0x2   :  { %s15_s10 = sshll.u32 %s152_s9, 4  ;;  %s16_s10 = int_to_ptr.vmem [resolvable:$true] %s15_s10 }
   0x3   :  { %18 = dma.hbm_to_vmem [thread:$0]  %s14_s8, 256, %s16_s10, [#allocation3]  }
   0x4   :  { %148 = dma.done.wait [#allocation3], 256  }
   0x5   :  { %149 = vsyncadd [#allocation3], 4294967040  ;;  %v23_v0 = vld [vmem:[#allocation2] sm:$0xff]  ;;  %v24_v1 = vld [vmem:[#allocation2 + $0x8] sm:$0xff]  ;;  %s153_s0 = smov [#allocation5]   ;;  %s78_s14 = sshll.u32 %s171_s1, 4  ;;  %s79_s14 = int_to_ptr.hbm [resolvable:$true] %s78_s14 }
   0x6   :  { %v88_v2 = vmul.f32 -1.442695, %v23_v0  ;;  %v89_v3 = vmul.f32 -1.442695, %v24_v1  ;;  %v25_v21 = vmax.f32 %v23_v0, 0.0  ;;  %v26_v24 = vmax.f32 %v24_v1, 0.0 }
   0x7   :  { %s76_s11 = sshll.u32 %s153_s0, 4  ;;  %s77_s11 = int_to_ptr.vmem [resolvable:$true] %s76_s11 }
   0x8   :  { %92 = vpow2.f32 %v88_v2 }
   0x9   :  { %94 = vpow2.f32 %v89_v3 }
   0xe   :  { %v93_v4 = vpop.eup %92 }
   0xf   :  { %v95_v5 = vpop.eup %94  ;;  %v33_v6 = vadd.f32 1.0, %v93_v4 }
  0x10   :  { %v34_v7 = vadd.f32 1.0, %v95_v5 }
  0x11   :  { %96 = vrcp.f32 %v33_v6  ;;  %vm40_vm0 = vweird.f32 %v33_v6  ;;  %v46_v11 = vand.u32 2147483648, %v33_v6  ;;  %v44_v14 = vand.u32 2147483647, %v33_v6 }
  0x12   :  { %98 = vrcp.f32 %v34_v7  ;;  %v61_v15 = vand.u32 2147483648, %v34_v7  ;;  %vm55_vm2 = vweird.f32 %v34_v7  ;;  %v59_v17 = vand.u32 2147483647, %v34_v7 }
  0x13   :  { %v47_v19 = vor.u32 1.1754944e-38, %v46_v11  ;;  %vm45_vm5 = vcmp.eq.f32.partialorder %v44_v14, 8.507059e+37 }
  0x14   :  { %v62_v23 = vor.u32 1.1754944e-38, %v61_v15  ;;  %vm60_vm7 = vcmp.eq.f32.partialorder %v59_v17, 8.507059e+37 }
  0x17   :  { %v97_v8 = vpop.eup %96 }
  0x18   :  { %v99_v9 = vpop.eup %98  ;;  %v36_v10 = vmul.f32 %v97_v8, %v33_v6  ;;  %vm41_vm1 = vweird.f32 %v97_v8 }
  0x19   :  { %v51_v12 = vmul.f32 %v99_v9, %v34_v7  ;;  %vm56_vm3 = vweird.f32 %v99_v9  ;;  %vm42_vm4 = vmor %vm40_vm0, %vm41_vm1 }
  0x1a   :  { %v37_v13 = vsub.f32 1.0, %v36_v10  ;;  %vm57_vm6 = vmor %vm55_vm2, %vm56_vm3 }
  0x1b   :  { %v52_v16 = vsub.f32 1.0, %v51_v12 }
  0x1c   :  { %v38_v18 = vmul.f32 %v97_v8, %v37_v13 }
  0x1d   :  { %v53_v20 = vmul.f32 %v99_v9, %v52_v16 }
  0x1e   :  { %v39_v22 = vadd.f32 %v97_v8, %v38_v18 }
  0x1f   :  { %v54_v25 = vadd.f32 %v99_v9, %v53_v20 }
  0x20   :  { %v43_v26 = vsel %vm42_vm4, %v97_v8, %v39_v22 }
  0x21   :  { %v48_v27 = vsel %vm45_vm5, %v47_v19, %v43_v26  ;;  %v58_v28 = vsel %vm57_vm6, %v99_v9, %v54_v25 }
  0x22   :  { %v65_v29 = vmul.f32 %v48_v27, %v25_v21  ;;  %v63_v30 = vsel %vm60_vm7, %v62_v23, %v58_v28 }
  0x23   :  { %v66_v31 = vmul.f32 %v63_v30, %v26_v24 }
  0x24   :  { %v67_v32 = vadd.f32 -0.15, %v65_v29 }
  0x25   :  { %v68_v33 = vadd.f32 -0.15, %v66_v31 }
  0x26   :  { %69 = vst [vmem:[#allocation5] sm:$0xff] %v67_v32 }
  0x27   :  { %70 = vst [vmem:[#allocation5 + $0x8] sm:$0xff] %v68_v33 }
  0x28   :  { %81 = dma.vmem_to_hbm [thread:$0]  %s77_s11, 256, %s79_s14, [#allocation4]  }
  0x29   :  { %150 = dma.done.wait [#allocation4], 256  }
  0x2a   :  { %151 = vsyncadd [#allocation4], 4294967040 }
  0x2b   :  { %86 = vsyncpa [#allocation3], 1 }
  0x2c   :  { %87 = vsyncpa [#allocation4], 1 }

</bundles_post_ra>
